<compile_context>
chip_gen: v6e
topology: v6e:2x2x1
jax: 0.10.0
libtpu: 0.0.40
codegen_flags: <defaults>
</compile_context>

<pallas_src>
import jax
import jax.numpy as jnp
from jax.experimental import pallas as pl
from jax.experimental.pallas import tpu as pltpu


def _round_up(x, m):
    return ((x + m - 1) // m) * m


def _mlp_kernel(s_ref, a_ref, w1s_ref, w1a_ref, b1_ref, w2_ref, b2_ref, o_ref):
    # s: [TB, Ds], a: [TB, Da], w1s: [Ds, H], w1a: [Da, H], b1: [1, H],
    # w2: [H, OUT], b2: [1, OUT], o: [TB, OUT]
    # Inputs arrive already in the matmul operand dtype (f32 or bf16);
    # accumulation is always f32 on the MXU; bias + ReLU run in f32 (VPU).
    h = jnp.dot(s_ref[...], w1s_ref[...], preferred_element_type=jnp.float32)
    h = h + jnp.dot(a_ref[...], w1a_ref[...], preferred_element_type=jnp.float32)
    h = jnp.maximum(h + b1_ref[...], 0.0)

    # Note: in the bf16 path h is rounded f32->bf16 before the second matmul
    # (slightly more error than weight-only bf16; covered by the 5e-2 check).
    y = jnp.dot(h.astype(w2_ref.dtype), w2_ref[...],
                preferred_element_type=jnp.float32)
    o_ref[...] = (y + b2_ref[...]).astype(o_ref.dtype)


def init_raw_params(key, input_dim, action_dim, output_dim, hidden=128):
    """nn.Linear-equivalent params, stored transposed as [in, out]."""
    k1, k2, k3, k4 = jax.random.split(key, 4)
    d_in = input_dim + action_dim
    s1 = 1.0 / jnp.sqrt(d_in)
    s2 = 1.0 / jnp.sqrt(hidden)
    w1 = jax.random.uniform(k1, (d_in, hidden), jnp.float32, -s1, s1)
    b1 = jax.random.uniform(k2, (hidden,), jnp.float32, -s1, s1)
    w2 = jax.random.uniform(k3, (hidden, output_dim), jnp.float32, -s2, s2)
    b2 = jax.random.uniform(k4, (output_dim,), jnp.float32, -s2, s2)
    return w1, b1, w2, b2


def pack_params(raw, input_dim, matmul_dtype=jnp.float32):
    """One-time repack for the kernel: split w1 (fuses the concat) and cast
    matmul operands.  No output-lane padding: w2/b2 keep their true out_dim."""
    w1, b1, w2, b2 = raw
    w1s = w1[:input_dim].astype(matmul_dtype)
    w1a = w1[input_dim:].astype(matmul_dtype)
    b1r = b1.reshape(1, -1).astype(jnp.float32)
    w2c = w2.astype(matmul_dtype)
    b2r = b2.reshape(1, -1).astype(jnp.float32)
    return (w1s, w1a, b1r, w2c, b2r)


def _choose_tile(B, tile_b, floor):
    """Pick the batch tile: as large as requested, capped so the grid keeps
    >= 2 steps when possible (v7x megacore), multiple of the sublane floor,
    shrunk (by halving) if that reduces the padded batch tail."""
    tb = min(tile_b, _round_up(B, floor))
    if B >= 2 * floor:
        tb = min(tb, _round_up(pl.cdiv(B, 2), floor))
    tb = max(tb, floor)

    best, best_pad = tb, _round_up(B, tb) - B
    cand = tb
    while cand > floor and best_pad > 0:
        cand = max(floor, _round_up(cand // 2, floor))
        pad = _round_up(B, cand) - B
        if pad < best_pad:
            best, best_pad = cand, pad
    return best


def dynamics_model_forward(state, action, params, tile_b=1024):
    """state: [B, input_dim], action: [B, ...] -> [B, out_dim] (f32)."""
    w1s, w1a, b1, w2, b2 = params
    B = state.shape[0]
    action = action.reshape(B, -1)                  # action.view(B, -1)
    d_s, d_a = w1s.shape[0], w1a.shape[0]
    out_dim = w2.shape[1]
    assert state.shape[1] == d_s and action.shape[1] == d_a

    # Cast inputs to the matmul operand dtype in the wrapper so the kernel
    # DMAs bf16 (not f32-then-cast) when running the bf16 path.
    wdt = w1s.dtype
    if state.dtype != wdt:
        state = state.astype(wdt)
    if action.dtype != wdt:
        action = action.astype(wdt)

    # bf16 blocks need 16-row sublane tiles; f32 needs 8.
    floor = 16 if wdt == jnp.bfloat16 else 8
    tb = _choose_tile(B, tile_b, floor)

    Bp = _round_up(B, tb)
    if Bp != B:
        state = jnp.pad(state, ((0, Bp - B), (0, 0)))
        action = jnp.pad(action, ((0, Bp - B), (0, 0)))

    out = pl.pallas_call(
        _mlp_kernel,
        out_shape=jax.ShapeDtypeStruct((Bp, out_dim), jnp.float32),
        grid=(Bp // tb,),
        in_specs=[
            pl.BlockSpec((tb, d_s), lambda i: (i, 0)),     # state tile streams
            pl.BlockSpec((tb, d_a), lambda i: (i, 0)),     # action tile streams
            pl.BlockSpec(w1s.shape, lambda i: (0, 0)),     # weights resident
            pl.BlockSpec(w1a.shape, lambda i: (0, 0)),
            pl.BlockSpec(b1.shape, lambda i: (0, 0)),
            pl.BlockSpec(w2.shape, lambda i: (0, 0)),
            pl.BlockSpec(b2.shape, lambda i: (0, 0)),
        ],
        # Lane-exact output block: last dim equals the full array dim, so the
        # (8,128) divisibility rule does not apply and no padded slab is
        # written to HBM.
        out_specs=pl.BlockSpec((tb, out_dim), lambda i: (i, 0)),
        compiler_params=pltpu.CompilerParams(
            dimension_semantics=("parallel",)),
    )(state, action, w1s, w1a, b1, w2, b2)

    return out[:B] if Bp != B else out


if __name__ == "__main__":
    # Small shapes consistent with the module: state [B, input_dim],
    # action [B, action_dim] (flattened inside forward), hidden = 128.
    B, input_dim, action_dim, output_dim = 8, 16, 4, 16

    key = jax.random.PRNGKey(0)
    k_state, k_action, k_params = jax.random.split(key, 3)

    state = jax.random.normal(k_state, (B, input_dim), jnp.float32)
    action = jax.random.normal(k_action, (B, action_dim), jnp.float32)
    raw = init_raw_params(k_params, input_dim, action_dim, output_dim)

    # Plain-JAX reference (same math as the PyTorch module).
    w1, b1, w2, b2 = raw
    x = jnp.concatenate([state, action.reshape(B, -1)], axis=1)
    ref = jnp.maximum(x @ w1 + b1, 0.0) @ w2 + b2

    # f32 matmul path: bit-level-comparable to the reference.
    params_f32 = pack_params(raw, input_dim, matmul_dtype=jnp.float32)
    out = dynamics_model_forward(state, action, params_f32)
    jax.block_until_ready(out)
    assert out.shape == (B, output_dim)
    assert jnp.allclose(out, ref, atol=1e-5, rtol=1e-5)

    # bf16 matmul operands (f32 accumulation): the fast path on all
    # generations (v5e MXU is natively bf16; only its VPU lacks bf16, and
    # bias/ReLU stay f32).
    params_bf16 = pack_params(raw, input_dim, matmul_dtype=jnp.bfloat16)
    out_bf16 = dynamics_model_forward(state, action, params_bf16)
    jax.block_until_ready(out_bf16)
    assert out_bf16.shape == (B, output_dim)
    assert jnp.allclose(out_bf16, ref, atol=5e-2, rtol=5e-2)

    print("KERNEL_OK")
</pallas_src>

<mosaic_0001>
module attributes {stable_mosaic.version = 11 : i64} {
  func.func @_mlp_kernel(%arg0: i32, %arg1: memref<8x16xf32, #tpu.memory_space<vmem>>, %arg2: memref<8x4xf32, #tpu.memory_space<vmem>>, %arg3: memref<16x128xf32, #tpu.memory_space<vmem>>, %arg4: memref<4x128xf32, #tpu.memory_space<vmem>>, %arg5: memref<1x128xf32, #tpu.memory_space<vmem>>, %arg6: memref<128x16xf32, #tpu.memory_space<vmem>>, %arg7: memref<1x16xf32, #tpu.memory_space<vmem>>, %arg8: memref<8x16xf32, #tpu.memory_space<vmem>>) attributes {dimension_semantics = [#tpu.dimension_semantics<parallel>], iteration_bounds = array<i64: 1>, scalar_prefetch = 0 : i64, scratch_operands = 0 : i64, tpu.core_type = #tpu.core_type<tc>, window_params = [{transform_indices = @transform_0, window_bounds = array<i64: 8, 16>}, {transform_indices = @transform_1, window_bounds = array<i64: 8, 4>}, {pipeline_mode = #tpu.pipeline_mode<synchronous>, transform_indices = @transform_2, window_bounds = array<i64: 16, 128>}, {pipeline_mode = #tpu.pipeline_mode<synchronous>, transform_indices = @transform_3, window_bounds = array<i64: 4, 128>}, {pipeline_mode = #tpu.pipeline_mode<synchronous>, transform_indices = @transform_4, window_bounds = array<i64: 1, 128>}, {pipeline_mode = #tpu.pipeline_mode<synchronous>, transform_indices = @transform_5, window_bounds = array<i64: 128, 16>}, {pipeline_mode = #tpu.pipeline_mode<synchronous>, transform_indices = @transform_6, window_bounds = array<i64: 1, 16>}, {transform_indices = @transform_7, window_bounds = array<i64: 8, 16>}]} {
    %c0 = arith.constant 0 : index
    %c0_0 = arith.constant 0 : index
    %0 = vector.load %arg1[%c0, %c0_0] : memref<8x16xf32, #tpu.memory_space<vmem>>, vector<8x16xf32>
    %c0_1 = arith.constant 0 : index
    %c0_2 = arith.constant 0 : index
    %1 = vector.load %arg3[%c0_1, %c0_2] : memref<16x128xf32, #tpu.memory_space<vmem>>, vector<16x128xf32>
    %cst = arith.constant dense<0.000000e+00> : vector<8x128xf32>
    %2 = tpu.matmul %0, %1, %cst {dimension_numbers = #tpu.dot_dimension_numbers<[1], [0], [0], [1], [0, 0, 1, 1], [], []>} : vector<8x16xf32>, vector<16x128xf32>, vector<8x128xf32> -> vector<8x128xf32>
    %c0_3 = arith.constant 0 : index
    %c0_4 = arith.constant 0 : index
    %3 = vector.load %arg2[%c0_3, %c0_4] : memref<8x4xf32, #tpu.memory_space<vmem>>, vector<8x4xf32>
    %c0_5 = arith.constant 0 : index
    %c0_6 = arith.constant 0 : index
    %4 = vector.load %arg4[%c0_5, %c0_6] : memref<4x128xf32, #tpu.memory_space<vmem>>, vector<4x128xf32>
    %cst_7 = arith.constant dense<0.000000e+00> : vector<8x128xf32>
    %5 = tpu.matmul %3, %4, %cst_7 {dimension_numbers = #tpu.dot_dimension_numbers<[1], [0], [0], [1], [0, 0, 1, 1], [], []>} : vector<8x4xf32>, vector<4x128xf32>, vector<8x128xf32> -> vector<8x128xf32>
    %6 = arith.addf %2, %5 : vector<8x128xf32>
    %c0_8 = arith.constant 0 : index
    %c0_9 = arith.constant 0 : index
    %7 = vector.load %arg5[%c0_8, %c0_9] : memref<1x128xf32, #tpu.memory_space<vmem>>, vector<1x128xf32>
    %8 = vector.broadcast %7 : vector<1x128xf32> to vector<8x128xf32>
    %9 = arith.addf %6, %8 : vector<8x128xf32>
    %cst_10 = arith.constant 0.000000e+00 : f32
    %10 = vector.broadcast %cst_10 : f32 to vector<8x128xf32>
    %11 = arith.maximumf %9, %10 : vector<8x128xf32>
    %c0_11 = arith.constant 0 : index
    %c0_12 = arith.constant 0 : index
    %12 = vector.load %arg6[%c0_11, %c0_12] : memref<128x16xf32, #tpu.memory_space<vmem>>, vector<128x16xf32>
    %cst_13 = arith.constant dense<0.000000e+00> : vector<8x16xf32>
    %13 = tpu.matmul %11, %12, %cst_13 {dimension_numbers = #tpu.dot_dimension_numbers<[1], [0], [0], [1], [0, 0, 1, 1], [], []>} : vector<8x128xf32>, vector<128x16xf32>, vector<8x16xf32> -> vector<8x16xf32>
    %c0_14 = arith.constant 0 : index
    %c0_15 = arith.constant 0 : index
    %14 = vector.load %arg7[%c0_14, %c0_15] : memref<1x16xf32, #tpu.memory_space<vmem>>, vector<1x16xf32>
    %15 = vector.broadcast %14 : vector<1x16xf32> to vector<8x16xf32>
    %16 = arith.addf %13, %15 : vector<8x16xf32>
    %c0_16 = arith.constant 0 : index
    %c0_17 = arith.constant 0 : index
    %17 = vector.load %arg8[%c0_16, %c0_17] : memref<8x16xf32, #tpu.memory_space<vmem>>, vector<8x16xf32>
    tpu.vector_store %arg8[%c0_16, %c0_17], %16 {strides = array<i32>} : memref<8x16xf32, #tpu.memory_space<vmem>>, vector<8x16xf32>,
    return
  }
  func.func @transform_0(%arg0: i32) -> (i32, i32) {
    %c0_i32 = arith.constant 0 : i32
    %c0_i32_0 = arith.constant 0 : i32
    return %arg0, %c0_i32 : i32, i32
  }
  func.func @transform_1(%arg0: i32) -> (i32, i32) {
    %c0_i32 = arith.constant 0 : i32
    %c0_i32_0 = arith.constant 0 : i32
    return %arg0, %c0_i32 : i32, i32
  }
  func.func @transform_2(%arg0: i32) -> (i32, i32) {
    %c0_i32 = arith.constant 0 : i32
    %c0_i32_0 = arith.constant 0 : i32
    %c0_i32_1 = arith.constant 0 : i32
    return %c0_i32, %c0_i32_0 : i32, i32
  }
  func.func @transform_3(%arg0: i32) -> (i32, i32) {
    %c0_i32 = arith.constant 0 : i32
    %c0_i32_0 = arith.constant 0 : i32
    %c0_i32_1 = arith.constant 0 : i32
    return %c0_i32, %c0_i32_0 : i32, i32
  }
  func.func @transform_4(%arg0: i32) -> (i32, i32) {
    %c0_i32 = arith.constant 0 : i32
    %c0_i32_0 = arith.constant 0 : i32
    %c0_i32_1 = arith.constant 0 : i32
    return %c0_i32, %c0_i32_0 : i32, i32
  }
  func.func @transform_5(%arg0: i32) -> (i32, i32) {
    %c0_i32 = arith.constant 0 : i32
    %c0_i32_0 = arith.constant 0 : i32
    %c0_i32_1 = arith.constant 0 : i32
    return %c0_i32, %c0_i32_0 : i32, i32
  }
  func.func @transform_6(%arg0: i32) -> (i32, i32) {
    %c0_i32 = arith.constant 0 : i32
    %c0_i32_0 = arith.constant 0 : i32
    %c0_i32_1 = arith.constant 0 : i32
    return %c0_i32, %c0_i32_0 : i32, i32
  }
  func.func @transform_7(%arg0: i32) -> (i32, i32) {
    %c0_i32 = arith.constant 0 : i32
    %c0_i32_0 = arith.constant 0 : i32
    return %arg0, %c0_i32 : i32, i32
  }
}

</mosaic_0001>

<bundles_post_ra>
// kernel: tpu_custom_call.1
= control target key start
LH: loop header
LB: loop body
LE: loop exit
PB: predicated region body
PF: predicated region fallthrough
CT: control target
= control target key end

     0   :  { %vm36_vm0 = vcmask 1043456   ;;  %v400_v2 = vmov 0.0   ;;  %vm401_vm1 = vmmov 0   ;;  %vm32_vm2 = vcmask 31744   ;;  %s542_s0 = inlined_call_operand.vmem [shape: f32[8,16], index: 0, kind: input, shape index: {}]   ;;  %s543_s1 = inlined_call_operand.vmem [shape: f32[8,4], index: 1, kind: input, shape index: {}]   ;;  %s544_s2 = inlined_call_operand.vmem [shape: f32[16,128], index: 2, kind: input, shape index: {}]   ;;  %s545_s3 = inlined_call_operand.vmem [shape: f32[4,128], index: 3, kind: input, shape index: {}]   ;;  %s546_s4 = inlined_call_operand.vmem [shape: f32[1,128], index: 4, kind: input, shape index: {}]   ;;  %s547_s5 = inlined_call_operand.vmem [shape: f32[128,16], index: 5, kind: input, shape index: {}]   ;;  %s548_s6 = inlined_call_operand.vmem [shape: f32[1,16], index: 6, kind: input, shape index: {}]   ;;  %s549_s7 = inlined_call_operand.hbm [shape: f32[8,16], index: 7, kind: output, shape index: {}]  }
   0x1   :  { %v31_v0 = vld [vmem:[%s545_s3] sm:$0xf]  ;;  %328 = vmatprep.subr.mxu1 %v400_v2  ;;  %330 = vmatprep.mubr.msk.f32.mxu1 %vm401_vm1, %v400_v2  ;;  %v29_v3 = vld [vmem:[%s544_s2 + $0x8] sm:$0xff]  ;;  %v208_v4 = vld [vmem:[%s547_s5 + $0x78] sm:$0xff]  ;;  %vm110_vm3 = vcmask 130048  }
   0x2   :  { %v30_v1 = vld [vmem:[%s543_s1] sm:$0xff]  ;;  %329 = vmatpush3.msk.msra.mxu1 %vm36_vm0, %v31_v0  ;;  %340 = vmatprep.subr.mxu0 %v400_v2  ;;  %v207_v7 = vld [vmem:[%s547_s5 + $0x70] sm:$0xff] }
   0x3   :  { %331 = vmatmul.mubr.msk.f32.vlgmr.msra.gmra.mxu1 %vm32_vm2, %v30_v1  ;;  %333 = vmatprep.subr.mxu1 %v400_v2  ;;  %v28_v5 = vld [vmem:[%s544_s2] sm:$0xff] }
   0x4   :  { %334 = vmatpush3.msra.mxu1 %v29_v3  ;;  %337 = vmatprep.mubr.msk.f32.mxu1 %vm401_vm1, %v400_v2  ;;  %v27_v6 = vld [vmem:[%s542_s0] sm:$0xff] }
   0x5   :  { %335 = vmatprep.subr.mxu1 %v400_v2  ;;  %341 = vmatpush3.msra.mxu0 %v208_v4 }
   0x6   :  { %12 = vsyncpa [#allocation3], 0  ;;  %336 = vmatpush3.msra.mxu1 %v28_v5  ;;  %342 = vmatprep.subr.mxu0 %v400_v2  ;;  %v206_v8 = vld [vmem:[%s547_s5 + $0x68] sm:$0xff]  ;;  %v205_v9 = vld [vmem:[%s547_s5 + $0x60] sm:$0xff]  ;;  %s402_s16 = smov [#allocation2]  }
   0x7   :  { %338 = vmatmul.mubr.msk.f32.vlgmr.msra.gmra.mxu1 %vm110_vm3, %v27_v6  ;;  %343 = vmatpush3.msra.mxu0 %v207_v7  ;;  %v204_v10 = vld [vmem:[%s547_s5 + $0x58] sm:$0xff]  ;;  %v203_v11 = vld [vmem:[%s547_s5 + $0x50] sm:$0xff]  ;;  %v202_v12 = vld [vmem:[%s547_s5 + $0x48] sm:$0xff]  ;;  %s293_s17 = sshll.u32 %s402_s16, 4  ;;  %s294_s17 = int_to_ptr.vmem [resolvable:$true] %s293_s17 }
   0x8   :  { %344 = vmatprep.subr.mxu0 %v400_v2  ;;  %372 = vmatprep.mubr.msk.f32.mxu0 %vm401_vm1, %v400_v2  ;;  %v201_v13 = vld [vmem:[%s547_s5 + $0x40] sm:$0xff]  ;;  %v200_v14 = vld [vmem:[%s547_s5 + $0x38] sm:$0xff]  ;;  %v199_v15 = vld [vmem:[%s547_s5 + $0x30] sm:$0xff]  ;;  %p383_p1 = scmp.lt.s32.totalorder %s294_s17, %s294_s17 }
   0x9   :  { %345 = vmatpush3.msra.mxu0 %v206_v8  ;;  %v198_v16 = vld [vmem:[%s547_s5 + $0x28] sm:$0xff]  ;;  %v197_v17 = vld [vmem:[%s547_s5 + $0x20] sm:$0xff]  ;;  %v196_v18 = vld [vmem:[%s547_s5 + $0x18] sm:$0xff] }
   0xa   :  { %346 = vmatprep.subr.mxu0 %v400_v2  ;;  %v195_v19 = vld [vmem:[%s547_s5 + $0x10] sm:$0xff]  ;;  %v194_v20 = vld [vmem:[%s547_s5 + $0x8] sm:$0xff]  ;;  %v193_v21 = vld [vmem:[%s547_s5] sm:$0xff]  ;;  %s378_s5 = scalar_lea.vmem %s294_s17, 128 }
   0xb   :  { %347 = vmatpush3.msra.mxu0 %v205_v9  ;;  %v304_v25 = vld [vmem:[%s546_s4] ss:$0 sm:$0xff]  ;;  %p379_p0 = scmp.ne.s32.totalorder %s294_s17, %s378_s5  ;;  %p384_p2 = scmp.lt.s32.totalorder %s378_s5, %s378_s5 }
   0xc   :  { %348 = vmatprep.subr.mxu0 %v400_v2  ;;  %v305_v30 = vld [vmem:[%s548_s6] ss:$0 sm:$0xff] }
   0xd   :  { %349 = vmatpush3.msra.mxu0 %v204_v10  ;;  %p385_p3 = por %p384_p2, %p383_p1 }
   0xe   :  { %350 = vmatprep.subr.mxu0 %v400_v2 }
   0xf   :  { %351 = vmatpush3.msra.mxu0 %v203_v11  ;;  %p386_p4 = pnand %p385_p3, %p379_p0 }
  0x10   :  { %352 = vmatprep.subr.mxu0 %v400_v2 }
  0x11   :  { %353 = vmatpush3.msra.mxu0 %v202_v12 }
  0x12   :  { %354 = vmatprep.subr.mxu0 %v400_v2 }
  0x13   :  { %355 = vmatpush3.msra.mxu0 %v201_v13 }
  0x14   :  { %356 = vmatprep.subr.mxu0 %v400_v2 }
  0x15   :  { %357 = vmatpush3.msra.mxu0 %v200_v14 }
  0x16   :  { %358 = vmatprep.subr.mxu0 %v400_v2 }
  0x17   :  { %359 = vmatpush3.msra.mxu0 %v199_v15 }
  0x18   :  { %360 = vmatprep.subr.mxu0 %v400_v2 }
  0x19   :  { %361 = vmatpush3.msra.mxu0 %v198_v16 }
  0x1a   :  { %362 = vmatprep.subr.mxu0 %v400_v2 }
  0x1b   :  { %363 = vmatpush3.msra.mxu0 %v197_v17 }
  0x1c   :  { %364 = vmatprep.subr.mxu0 %v400_v2 }
  0x1d   :  { %365 = vmatpush3.msra.mxu0 %v196_v18 }
  0x1e   :  { %366 = vmatprep.subr.mxu0 %v400_v2 }
  0x1f   :  { %367 = vmatpush3.msra.mxu0 %v195_v19 }
  0x20   :  { %368 = vmatprep.subr.mxu0 %v400_v2 }
  0x21   :  { %369 = vmatpush3.msra.mxu0 %v194_v20 }
  0x22   :  { %370 = vmatprep.subr.mxu0 %v400_v2 }
  0x23   :  { %371 = vmatpush3.msra.mxu0 %v193_v21 }
  0xc3   :  { %v106_v22 = vpop.f32.mrf.mxu1 }
  0xc5   :  { %v332_v23 = vpop.f32.mrf.mxu1 }
  0xc7   :  { %v180_v24 = vpop.f32.mrf.mxu1 }
  0xc8   :  { %v181_v26 = vadd.f32 %v180_v24, %v106_v22 }
  0xc9   :  { %v339_v27 = vpop.f32.mrf.mxu1 }
  0xca   :  { %v191_v28 = vadd.f32 %v304_v25, %v181_v26 }
  0xcc   :  { %v192_v29 = vmax.f32 %v191_v28, 0.0 }
  0xce   :  { %373 = vmatmul.mubr.f32.vlgmr.msra.gmra.mxu0 %v192_v29 }
 0x18e   :  { %v282_v31 = vpop.f32.mrf.mxu0 }
 0x18f   :  { %v283_v32 = vadd.f32 %v305_v30, %v282_v31 }
 0x190   :  { %v374_v33 = vpop.f32.mrf.mxu0 }
 0x191   :  { %286 = vst.msk [vmem:[#allocation2] sm:$0xff] %vm110_vm3, %v283_v32 }
 0x192   :  { %389 = shalt.err (!%p386_p4)
}
 0x193   :  { %296 = dma.vmem_to_hbm [thread:$0]  %s294_s17, 128, %s549_s7, [#allocation3]  }
 0x194   :  { %398 = dma.done.wait [#allocation3], 128  }
 0x195   :  { %399 = vsyncadd [#allocation3], 4294967168 }
 0x196   :  { %300 = vsyncpa [#allocation3], 1 }

</bundles_post_ra>
